<compile_context>
chip_gen: v6e
topology: v6e:2x2x1
jax: 0.10.0
libtpu: 0.0.40
codegen_flags: <defaults>
</compile_context>

<pallas_src>
import jax
import jax.numpy as jnp
from jax.experimental import pallas as pl
from jax.experimental.pallas import tpu as pltpu

_LANES = 128            # vreg lane width
_SUBLANES = 8           # vreg sublane height (f32)
_MAX_TILE = 512         # max batch rows per grid step (replay-batch regime)
_MXU_DTYPE = jnp.bfloat16   # layer-2 MXU operand dtype (f32 accumulation)


def _round_up(n, m):
    return ((n + m - 1) // m) * m


def _cdiv(a, b):
    return -(-a // b)


def _layout(obs_size, hidden_size, n_actions):
    """Row/lane layout of the single packed parameter buffer (all segments
    start on 8-sublane boundaries so in-kernel slices are aligned loads)."""
    r1 = _round_up(obs_size, _SUBLANES)        # row of b1; w1 lives in [0, obs)
    r2 = r1 + _SUBLANES                        # first row of w2 (8-aligned)
    hp = _round_up(hidden_size, _SUBLANES)     # w2 segment height
    lanes = _round_up(max(hidden_size, n_actions), _LANES)
    rows = _round_up(r2 + hp + 1, _SUBLANES)   # + b2 row, rounded to sublanes
    return r1, r2, hp, rows, lanes


def _make_kernel(obs_size, hidden_size, n_actions, r1, r2, hp, use_vpu):
    def kernel(x_ref, p_ref, o_ref):
        # In-kernel cast mirrors torch's `x.float()` (no wrapper-side XLA cast).
        x = x_ref[...].astype(jnp.float32)
        b1 = p_ref[r1:r1 + 1, 0:hidden_size]               # (1, hidden)

        if use_vpu:
            # Tiny contraction (K=obs=4 for CartPole) on small tiles: unrolled
            # broadcast-MACs on the VPU beat a ~3%-utilized MXU pass.
            w1 = p_ref[0:r1, 0:hidden_size]                 # one aligned load
            h = jnp.broadcast_to(b1, (x.shape[0], hidden_size))
            for k in range(obs_size):                       # static unroll
                h = h + x[:, k:k + 1] * w1[k:k + 1, :]
        else:
            # MXU fallback for larger obs sizes or large batch tiles.
            w1 = p_ref[0:obs_size, 0:hidden_size]
            h = jnp.dot(x, w1, preferred_element_type=jnp.float32) + b1

        h = jnp.maximum(h, 0.0)                             # ReLU, f32 on VPU

        # Layer 2 on the MXU with bf16 operands, f32 accumulation. The packed
        # w2 segment is lane-padded with zeros; we slice the narrow result.
        w2 = p_ref[r2:r2 + hidden_size, :].astype(_MXU_DTYPE)
        y = jnp.dot(h.astype(_MXU_DTYPE), w2,
                    preferred_element_type=jnp.float32)
        b2 = p_ref[r2 + hp:r2 + hp + 1, 0:n_actions]        # (1, n_actions)

        # Narrow (tb, n_actions) store: masked vst, but no 64x padded-output
        # HBM traffic and no wrapper-side slice re-read.
        o_ref[...] = (y[:, 0:n_actions] + b2).astype(o_ref.dtype)

    return kernel


def init_params(key, obs_size, hidden_size, n_actions):
    """Deterministic synthetic parameters (torch-Linear-like uniform init).
    Weights stored as [in, out] so the math is y = x @ w + b."""
    k1, k2, k3, k4 = jax.random.split(key, 4)
    bound1 = 1.0 / (obs_size ** 0.5)
    bound2 = 1.0 / (hidden_size ** 0.5)
    w1 = jax.random.uniform(k1, (obs_size, hidden_size), jnp.float32,
                            -bound1, bound1)
    b1 = jax.random.uniform(k2, (hidden_size,), jnp.float32, -bound1, bound1)
    w2 = jax.random.uniform(k3, (hidden_size, n_actions), jnp.float32,
                            -bound2, bound2)
    b2 = jax.random.uniform(k4, (n_actions,), jnp.float32, -bound2, bound2)
    return w1, b1, w2, b2


def prepare_params(w1, b1, w2, b2):
    """One-time packing of all parameters into a single f32 buffer (call once,
    outside the per-step path). Segments are 8-sublane aligned; unused rows
    and lane columns are zero."""
    obs_size, hidden_size = w1.shape
    n_actions = w2.shape[1]
    r1, r2, hp, rows, lanes = _layout(obs_size, hidden_size, n_actions)
    p = jnp.zeros((rows, lanes), jnp.float32)
    p = p.at[0:obs_size, 0:hidden_size].set(w1.astype(jnp.float32))
    p = p.at[r1, 0:hidden_size].set(b1.astype(jnp.float32))
    p = p.at[r2:r2 + hidden_size, 0:n_actions].set(w2.astype(jnp.float32))
    p = p.at[r2 + hp, 0:n_actions].set(b2.astype(jnp.float32))
    return p


def net_forward(x, packed_params, obs_size, hidden_size, n_actions):
    """Forward pass of Net. x: [B, obs_size] (any dtype; cast to f32 in-kernel
    like x.float()). packed_params from prepare_params. Returns [B, n_actions]
    float32 (layer 2 uses bf16 MXU operands with f32 accumulation)."""
    batch, obs = x.shape
    assert obs == obs_size
    r1, r2, hp, rows, lanes = _layout(obs_size, hidden_size, n_actions)
    assert packed_params.shape == (rows, lanes)

    # Batch tiling: weights stay VMEM-resident (constant index_map), x/out
    # stream through batch tiles. Tile size is right-sized to the batch so
    # padding never blows up, and >=2 programs once batch >= 512 so the
    # "parallel" axis spans both v7x TensorCores (harmless on v5e/v6e).
    n_tiles = _cdiv(batch, _MAX_TILE)
    if batch >= _MAX_TILE:
        n_tiles = max(n_tiles, 2)
    tb = _round_up(_cdiv(batch, n_tiles), _SUBLANES)
    padded = tb * n_tiles
    if padded != batch:
        x = jnp.pad(x, ((0, padded - batch), (0, 0)))

    use_vpu = (obs_size <= _SUBLANES) and (tb < 256)
    kernel = _make_kernel(obs_size, hidden_size, n_actions, r1, r2, hp, use_vpu)

    flops = 2 * padded * (obs_size * hidden_size + hidden_size * lanes)
    bytes_accessed = (x.size * x.dtype.itemsize
                      + packed_params.size * packed_params.dtype.itemsize
                      + padded * n_actions * 4)

    out = pl.pallas_call(
        kernel,
        out_shape=jax.ShapeDtypeStruct((padded, n_actions), jnp.float32),
        grid_spec=pltpu.PrefetchScalarGridSpec(
            num_scalar_prefetch=0,
            grid=(n_tiles,),
            in_specs=[
                pl.BlockSpec((tb, obs_size), lambda i: (i, 0)),   # x (streamed)
                pl.BlockSpec((rows, lanes), lambda i: (0, 0)),    # packed params
            ],
            out_specs=pl.BlockSpec((tb, n_actions), lambda i: (i, 0)),
        ),
        compiler_params=pltpu.CompilerParams(
            dimension_semantics=("parallel",),
        ),
        cost_estimate=pl.CostEstimate(flops=flops, transcendentals=0,
                                      bytes_accessed=bytes_accessed),
    )(x, packed_params)

    if padded != batch:
        out = out[:batch]
    return out
    # TODO(synk): for the acting path, fuse the argmax over actions into the
    # kernel so only a (B,) int32 leaves VMEM.


if __name__ == "__main__":
    # CartPole-like sizes: obs_size=4, hidden=128, n_actions=2, batch=8.
    obs_size, hidden_size, n_actions, batch = 4, 128, 2, 8

    key = jax.random.PRNGKey(0)
    kx, kp = jax.random.split(key)
    x = jax.random.normal(kx, (batch, obs_size), jnp.float32)
    w1, b1, w2, b2 = init_params(kp, obs_size, hidden_size, n_actions)

    # One-time kernel-friendly param packing (single resident VMEM buffer).
    params = prepare_params(w1, b1, w2, b2)

    out = net_forward(x, params, obs_size, hidden_size, n_actions)
    jax.block_until_ready(out)

    # Pure-JAX reference (torch semantics: relu(x @ W1 + b1) @ W2 + b2).
    xf = x.astype(jnp.float32)
    ref = jnp.maximum(xf @ w1 + b1, 0.0) @ w2 + b2
    assert out.shape == (batch, n_actions)
    # Layer 2 uses bf16 MXU operands (f32 accumulation), so tolerance is
    # loosened accordingly vs the exact-f32 reference.
    assert jnp.allclose(out, ref, atol=3e-2, rtol=1e-2), "mismatch vs reference"

    print("KERNEL_OK")
</pallas_src>

<mosaic_0001>
module attributes {stable_mosaic.version = 11 : i64} {
  func.func @kernel(%arg0: i32, %arg1: memref<8x4xf32, #tpu.memory_space<vmem>>, %arg2: memref<152x128xf32, #tpu.memory_space<vmem>>, %arg3: memref<8x2xf32, #tpu.memory_space<vmem>>) attributes {dimension_semantics = [#tpu.dimension_semantics<parallel>], iteration_bounds = array<i64: 1>, scalar_prefetch = 0 : i64, scratch_operands = 0 : i64, tpu.core_type = #tpu.core_type<tc>, window_params = [{transform_indices = @transform_0, window_bounds = array<i64: 8, 4>}, {pipeline_mode = #tpu.pipeline_mode<synchronous>, transform_indices = @transform_1, window_bounds = array<i64: 152, 128>}, {transform_indices = @transform_2, window_bounds = array<i64: 8, 2>}]} {
    %c0 = arith.constant 0 : index
    %c0_0 = arith.constant 0 : index
    %0 = vector.load %arg1[%c0, %c0_0] : memref<8x4xf32, #tpu.memory_space<vmem>>, vector<8x4xf32>
    %c8 = arith.constant 8 : index
    %c0_1 = arith.constant 0 : index
    %1 = vector.load %arg2[%c8, %c0_1] : memref<152x128xf32, #tpu.memory_space<vmem>>, vector<1x128xf32>
    %c0_2 = arith.constant 0 : index
    %c0_3 = arith.constant 0 : index
    %2 = vector.load %arg2[%c0_2, %c0_3] : memref<152x128xf32, #tpu.memory_space<vmem>>, vector<8x128xf32>
    %3 = vector.shape_cast %1 : vector<1x128xf32> to vector<1x128xf32>
    %4 = vector.broadcast %3 : vector<1x128xf32> to vector<8x128xf32>
    %5 = vector.extract_strided_slice %0 {offsets = [0, 0], sizes = [8, 1], strides = [1, 1]} : vector<8x4xf32> to vector<8x1xf32>
    %6 = vector.extract_strided_slice %2 {offsets = [0, 0], sizes = [1, 128], strides = [1, 1]} : vector<8x128xf32> to vector<1x128xf32>
    %7 = vector.broadcast %5 : vector<8x1xf32> to vector<8x128xf32>
    %8 = vector.broadcast %6 : vector<1x128xf32> to vector<8x128xf32>
    %9 = arith.mulf %7, %8 : vector<8x128xf32>
    %10 = arith.addf %4, %9 : vector<8x128xf32>
    %11 = vector.extract_strided_slice %0 {offsets = [0, 1], sizes = [8, 1], strides = [1, 1]} : vector<8x4xf32> to vector<8x1xf32>
    %12 = vector.extract_strided_slice %2 {offsets = [1, 0], sizes = [1, 128], strides = [1, 1]} : vector<8x128xf32> to vector<1x128xf32>
    %13 = vector.broadcast %11 : vector<8x1xf32> to vector<8x128xf32>
    %14 = vector.broadcast %12 : vector<1x128xf32> to vector<8x128xf32>
    %15 = arith.mulf %13, %14 : vector<8x128xf32>
    %16 = arith.addf %10, %15 : vector<8x128xf32>
    %17 = vector.extract_strided_slice %0 {offsets = [0, 2], sizes = [8, 1], strides = [1, 1]} : vector<8x4xf32> to vector<8x1xf32>
    %18 = vector.extract_strided_slice %2 {offsets = [2, 0], sizes = [1, 128], strides = [1, 1]} : vector<8x128xf32> to vector<1x128xf32>
    %19 = vector.broadcast %17 : vector<8x1xf32> to vector<8x128xf32>
    %20 = vector.broadcast %18 : vector<1x128xf32> to vector<8x128xf32>
    %21 = arith.mulf %19, %20 : vector<8x128xf32>
    %22 = arith.addf %16, %21 : vector<8x128xf32>
    %23 = vector.extract_strided_slice %0 {offsets = [0, 3], sizes = [8, 1], strides = [1, 1]} : vector<8x4xf32> to vector<8x1xf32>
    %24 = vector.extract_strided_slice %2 {offsets = [3, 0], sizes = [1, 128], strides = [1, 1]} : vector<8x128xf32> to vector<1x128xf32>
    %25 = vector.broadcast %23 : vector<8x1xf32> to vector<8x128xf32>
    %26 = vector.broadcast %24 : vector<1x128xf32> to vector<8x128xf32>
    %27 = arith.mulf %25, %26 : vector<8x128xf32>
    %28 = arith.addf %22, %27 : vector<8x128xf32>
    %cst = arith.constant 0.000000e+00 : f32
    %29 = vector.broadcast %cst : f32 to vector<8x128xf32>
    %30 = arith.maximumf %28, %29 : vector<8x128xf32>
    %c16 = arith.constant 16 : index
    %c0_4 = arith.constant 0 : index
    %31 = vector.load %arg2[%c16, %c0_4] : memref<152x128xf32, #tpu.memory_space<vmem>>, vector<128x128xf32>
    %32 = arith.truncf %31 : vector<128x128xf32> to vector<128x128xbf16>
    %33 = arith.truncf %30 : vector<8x128xf32> to vector<8x128xbf16>
    %cst_5 = arith.constant dense<0.000000e+00> : vector<8x128xf32>
    %34 = tpu.matmul %33, %32, %cst_5 {dimension_numbers = #tpu.dot_dimension_numbers<[1], [0], [0], [1], [0, 0, 1, 1], [], []>} : vector<8x128xbf16>, vector<128x128xbf16>, vector<8x128xf32> -> vector<8x128xf32>
    %c144 = arith.constant 144 : index
    %c0_6 = arith.constant 0 : index
    %35 = vector.load %arg2[%c144, %c0_6] : memref<152x128xf32, #tpu.memory_space<vmem>>, vector<1x2xf32>
    %36 = vector.extract_strided_slice %34 {offsets = [0, 0], sizes = [8, 2], strides = [1, 1]} : vector<8x128xf32> to vector<8x2xf32>
    %37 = vector.broadcast %35 : vector<1x2xf32> to vector<8x2xf32>
    %38 = arith.addf %36, %37 : vector<8x2xf32>
    %c0_7 = arith.constant 0 : index
    %c0_8 = arith.constant 0 : index
    %39 = vector.load %arg3[%c0_7, %c0_8] : memref<8x2xf32, #tpu.memory_space<vmem>>, vector<8x2xf32>
    tpu.vector_store %arg3[%c0_7, %c0_8], %38 {strides = array<i32>} : memref<8x2xf32, #tpu.memory_space<vmem>>, vector<8x2xf32>,
    return
  }
  func.func @transform_0(%arg0: i32) -> (i32, i32) {
    %c0_i32 = arith.constant 0 : i32
    %c0_i32_0 = arith.constant 0 : i32
    return %arg0, %c0_i32 : i32, i32
  }
  func.func @transform_1(%arg0: i32) -> (i32, i32) {
    %c0_i32 = arith.constant 0 : i32
    %c0_i32_0 = arith.constant 0 : i32
    %c0_i32_1 = arith.constant 0 : i32
    return %c0_i32, %c0_i32_0 : i32, i32
  }
  func.func @transform_2(%arg0: i32) -> (i32, i32) {
    %c0_i32 = arith.constant 0 : i32
    %c0_i32_0 = arith.constant 0 : i32
    return %arg0, %c0_i32 : i32, i32
  }
}

</mosaic_0001>

<bundles_post_ra>
// kernel: tpu_custom_call.1
= control target key start
LH: loop header
LB: loop body
LE: loop exit
PB: predicated region body
PF: predicated region fallthrough
CT: control target
= control target key end

     0   :  { %7 = vsyncpa [#allocation3], 0  ;;  %s220_s9 = smov [#allocation2]   ;;  %s253_s0 = inlined_call_operand.vmem [shape: f32[8,4], index: 0, kind: input, shape index: {}]   ;;  %s254_s1 = inlined_call_operand.hbm [shape: f32[152,128], index: 1, kind: input, shape index: {}]   ;;  %s255_s2 = inlined_call_operand.vmem [shape: f32[8,2], index: 2, kind: output, shape index: {}]  }
   0x1   :  { %s15_s10 = sshll.u32 %s220_s9, 4  ;;  %s16_s10 = int_to_ptr.vmem [resolvable:$true] %s15_s10 }
   0x2   :  { %s206_s11 = scalar_lea.vmem %s16_s10, 2432  ;;  %p211_p1 = scmp.lt.s32.totalorder %s16_s10, %s16_s10 }
   0x3   :  { %p207_p0 = scmp.ne.s32.totalorder %s16_s10, %s206_s11  ;;  %p212_p2 = scmp.lt.s32.totalorder %s206_s11, %s206_s11 }
   0x5   :  { %p213_p3 = por %p212_p2, %p211_p1 }
   0x7   :  { %p214_p4 = pnand %p213_p3, %p207_p0 }
   0x9   :  { %217 = shalt.err (!%p214_p4)
}
   0xa   :  { %s221_s12 = smov 128   ;;  %s222_s13 = smov 8  }
   0xb   :  { %21 = dma.hbm_to_vmem [thread:$0]  %s254_s1, 2432, %s16_s10, [#allocation3], %s221_s12, %s221_s12, %s222_s13  }
   0xc   :  { %218 = dma.done.wait [#allocation3], 2432  }
   0xd   :  { %219 = vsyncadd [#allocation3], 4294964864  ;;  %v223_v0 = vmov 0   ;;  %v224_v1 = vmov 2   ;;  %v225_v2 = vmov 0.0   ;;  %v26_v3 = vld [vmem:[%s253_s0] sm:$0xff]  ;;  %v38_v30 = vlaneseq }
   0xe   :  { %193 = vset.pattern.permute.xlu0 %v223_v0  ;;  %195 = vset.pattern.permute.xlu1 %v224_v1  ;;  %v89_v4 = vld [vmem:[#allocation2 + $0x80] sm:$0xff]  ;;  %v90_v5 = vld [vmem:[#allocation2 + $0x88] sm:$0xff]  ;;  %v87_v7 = vld [vmem:[#allocation2 + $0x70] sm:$0xff]  ;;  %v226_v12 = vmov 1   ;;  %v227_v13 = vmov 3   ;;  %vm228_vm0 = vmmov 0  }
   0xf   :  { %164 = vmatprep.subr.bf16.mxu0 %v225_v2  ;;  %35 = vperm.xlu0 %193, %v26_v3   ;;  %v98_v6 = vpack.c.bf16 %v90_v5, %v89_v4  ;;  %v88_v8 = vld [vmem:[#allocation2 + $0x78] sm:$0xff]  ;;  %v85_v10 = vld [vmem:[#allocation2 + $0x60] sm:$0xff]  ;;  %v86_v11 = vld [vmem:[#allocation2 + $0x68] sm:$0xff]  ;;  %v39_v31 = vshrl.u32 %v38_v30, 7  ;;  %vm146_vm1 = vcmask 15360  }
  0x10   :  { %55 = vperm.xlu1 %195, %v26_v3   ;;  %v97_v9 = vpack.c.bf16 %v88_v8, %v87_v7  ;;  %v96_v14 = vpack.c.bf16 %v86_v11, %v85_v10  ;;  %v83_v15 = vld [vmem:[#allocation2 + $0x50] sm:$0xff]  ;;  %v84_v16 = vld [vmem:[#allocation2 + $0x58] sm:$0xff]  ;;  %v81_v18 = vld [vmem:[#allocation2 + $0x40] sm:$0xff]  ;;  %180 = vmatprep.mubr.msk.bf16.mxu0 %vm228_vm0, %v225_v2 }
  0x11   :  { %165 = vmatpush3.bf16.msra.mxu0 %v98_v6  ;;  %v95_v17 = vpack.c.bf16 %v84_v16, %v83_v15  ;;  %v82_v19 = vld [vmem:[#allocation2 + $0x48] sm:$0xff]  ;;  %v79_v21 = vld [vmem:[#allocation2 + $0x30] sm:$0xff]  ;;  %v80_v22 = vld [vmem:[#allocation2 + $0x38] sm:$0xff]  ;;  %v40_v32 = vsub.s32 0, %v39_v31  ;;  %v50_v35 = vsub.s32 1, %v39_v31  ;;  %v60_v37 = vsub.s32 2, %v39_v31 }
  0x12   :  { %166 = vmatprep.subr.bf16.mxu0 %v225_v2  ;;  %v94_v20 = vpack.c.bf16 %v82_v19, %v81_v18  ;;  %v93_v23 = vpack.c.bf16 %v80_v22, %v79_v21  ;;  %v77_v24 = vld [vmem:[#allocation2 + $0x20] sm:$0xff]  ;;  %v78_v25 = vld [vmem:[#allocation2 + $0x28] sm:$0xff]  ;;  %v75_v27 = vld [vmem:[#allocation2 + $0x10] sm:$0xff]  ;;  %v70_v39 = vsub.s32 3, %v39_v31 }
  0x13   :  { %194 = vset.pattern.permute.xlu0 %v226_v12  ;;  %v92_v26 = vpack.c.bf16 %v78_v25, %v77_v24  ;;  %v76_v28 = vld [vmem:[#allocation2 + $0x18] sm:$0xff]  ;;  %v28_v33 = vld [vmem:[#allocation2] sm:$0xff]  ;;  %v153_v42 = vld [vmem:[#allocation2 + $0x8] ss:$0 sm:$0xff] }
  0x14   :  { %196 = vset.pattern.permute.xlu1 %v227_v13  ;;  %45 = vperm.xlu0 %194, %v26_v3   ;;  %v91_v29 = vpack.c.bf16 %v76_v28, %v75_v27  ;;  %v41_v34 = vrot.slane %v28_v33, %v40_v32  ;;  %v51_v41 = vrot.slane %v28_v33, %v50_v35  ;;  %v154_v56 = vld [vmem:[#allocation2 + $0x90] ss:$0 sm:$0xff] }
  0x15   :  { %65 = vperm.xlu1 %196, %v26_v3   ;;  %167 = vmatpush3.bf16.msra.mxu0 %v97_v9  ;;  %v61_v43 = vrot.slane %v28_v33, %v60_v37  ;;  %v71_v44 = vrot.slane %v28_v33, %v70_v39 }
  0x16   :  { %168 = vmatprep.subr.bf16.mxu0 %v225_v2 }
  0x18   :  { %197 = vset.pattern.permute.xlu0 %v227_v13 }
  0x19   :  { %169 = vmatpush3.bf16.msra.mxu0 %v96_v14 }
  0x1a   :  { %170 = vmatprep.subr.bf16.mxu0 %v225_v2 }
  0x1d   :  { %171 = vmatpush3.bf16.msra.mxu0 %v95_v17 }
  0x1e   :  { %172 = vmatprep.subr.bf16.mxu0 %v225_v2 }
  0x21   :  { %173 = vmatpush3.bf16.msra.mxu0 %v94_v20 }
  0x22   :  { %174 = vmatprep.subr.bf16.mxu0 %v225_v2 }
  0x25   :  { %175 = vmatpush3.bf16.msra.mxu0 %v93_v23 }
  0x26   :  { %176 = vmatprep.subr.bf16.mxu0 %v225_v2 }
  0x29   :  { %177 = vmatpush3.bf16.msra.mxu0 %v92_v26 }
  0x2a   :  { %178 = vmatprep.subr.bf16.mxu0 %v225_v2 }
  0x2d   :  { %179 = vmatpush3.bf16.msra.mxu0 %v91_v29 }
  0x8a   :  { %v36_v36 = vpop.permute.xlu0 %35 }
  0x8b   :  { %v56_v38 = vpop.permute.xlu1 %55  ;;  %v42_v40 = vmul.f32 %v41_v34, %v36_v36 }
  0x8c   :  { %v62_v49 = vmul.f32 %v61_v43, %v56_v38 }
  0x8d   :  { %v43_v47 = vadd.f32 %v153_v42, %v42_v40 }
  0x8f   :  { %v46_v45 = vpop.permute.xlu0 %45 }
  0x90   :  { %v66_v46 = vpop.permute.xlu1 %65  ;;  %v52_v48 = vmul.f32 %v51_v41, %v46_v45 }
  0x91   :  { %v72_v51 = vmul.f32 %v71_v44, %v66_v46 }
  0x92   :  { %v53_v50 = vadd.f32 %v52_v48, %v43_v47 }
  0x94   :  { %v63_v52 = vadd.f32 %v62_v49, %v53_v50 }
  0x96   :  { %v73_v53 = vadd.f32 %v72_v51, %v63_v52 }
  0x98   :  { %v74_v54 = vmax.f32 %v73_v53, 0.0 }
  0x9a   :  { %v99_v55 = vpack.c.bf16 %v74_v54, %v74_v54 }
  0x9c   :  { %181 = vmatmul.mubr.bf16.vlgmr.msra.gmra.mxu0 %v99_v55 }
 0x15c   :  { %v134_v57 = vpop.f32.mrf.mxu0 }
 0x15d   :  { %v145_v58 = vadd.f32 %v154_v56, %v134_v57 }
 0x15e   :  { %v182_v59 = vpop.f32.mrf.mxu0 }
 0x15f   :  { %147 = vst.msk [vmem:[%s255_s2] sm:$0xff] %vm146_vm1, %v145_v58 }
 0x160   :  { %v137_v60 = vpop.f32.mrf.mxu0 }
 0x162   :  { %v183_v61 = vpop.f32.mrf.mxu0 }
 0x163   :  { %152 = vsyncpa [#allocation3], 1 }

</bundles_post_ra>
